<compile_context>
chip_gen: v7x
topology: tpu7x:2x2x1
jax: 0.10.0
libtpu: 0.0.40
codegen_flags: <defaults>
</compile_context>

<pallas_src>
import functools

import jax
import jax.numpy as jnp
import numpy as np
from jax import lax
from jax.experimental import pallas as pl
from jax.experimental.pallas import tpu as pltpu


# ----------------------------------------------------------------------------
# One-pass kernel: the full (n, tile_g) gene-column tile is resident in VMEM.
# ----------------------------------------------------------------------------
def _onepass_kernel(x_ref, o_ref):
    # x_ref: (n, tile_g) with n = T*B; o_ref: (B, tile_g)
    x = x_ref[...].astype(jnp.float32)
    n = x.shape[0]

    # Pass 1: per-gene mean.
    mean_g = jnp.sum(x, axis=0, keepdims=True) * (1.0 / n)          # (1, tile_g)

    # Pass 2: unbiased variance (stable diff^2 form).
    diff = x - mean_g
    var_g = jnp.sum(diff * diff, axis=0, keepdims=True) * (1.0 / (n - 1))

    # z < 3  <=>  x < mean + 3*std.  Constant genes (var == 0) -> z is NaN -> 0
    # in the reference, i.e. keep everything, so force thresh = +inf.
    thresh = jnp.where(var_g > 0.0,
                       mean_g + 3.0 * jnp.sqrt(var_g),
                       jnp.full_like(var_g, jnp.inf))               # (1, tile_g)

    keep = (x < thresh).astype(jnp.float32)                         # (n, tile_g)
    cnt = jnp.sum(keep, axis=0, keepdims=True)
    s = jnp.sum(x * keep, axis=0, keepdims=True)
    m = s * pl.reciprocal(cnt, approx=False)                        # masked mean

    # Every batch row of x0 gets the same per-gene scalar.
    o_ref[...] = jnp.broadcast_to(m, o_ref.shape).astype(o_ref.dtype)


# ----------------------------------------------------------------------------
# Streaming kernel: n = T*B tiled; grid axis 1 walks the n-tiles twice.
#   k in [0, num_n)          phase 0: accumulate sum / sumsq  -> threshold
#   k in [num_n, 2*num_n)    phase 1: accumulate masked sum / count -> output
# ----------------------------------------------------------------------------
def _streaming_kernel(x_ref, o_ref,
                      sum_ref, sumsq_ref, msum_ref, cnt_ref, thr_ref,
                      *, n_real, tile_n, num_n):
    k = pl.program_id(1)
    x = x_ref[...].astype(jnp.float32)                              # (tile_n, tile_g)

    # Validity of rows in this n-tile (last tile may be zero-padded).
    ni = k % num_n
    row = ni * tile_n + lax.broadcasted_iota(jnp.int32, x.shape, 0)
    rvalid = (row < n_real).astype(jnp.float32)

    @pl.when(k == 0)
    def _():
        sum_ref[...] = jnp.zeros_like(sum_ref)
        sumsq_ref[...] = jnp.zeros_like(sumsq_ref)
        msum_ref[...] = jnp.zeros_like(msum_ref)
        cnt_ref[...] = jnp.zeros_like(cnt_ref)

    @pl.when(k < num_n)          # phase 0: moment accumulation
    def _():
        xv = x * rvalid
        sum_ref[...] += jnp.sum(xv, axis=0, keepdims=True)
        sumsq_ref[...] += jnp.sum(xv * x, axis=0, keepdims=True)

    @pl.when(k == num_n - 1)     # finalize moments -> per-gene threshold
    def _():
        inv_n = 1.0 / n_real
        mean_g = sum_ref[...] * inv_n
        var_g = (sumsq_ref[...] - n_real * mean_g * mean_g) * (1.0 / (n_real - 1))
        var_g = jnp.maximum(var_g, 0.0)
        thr_ref[...] = jnp.where(var_g > 0.0,
                                 mean_g + 3.0 * jnp.sqrt(var_g),
                                 jnp.full_like(var_g, jnp.inf))

    @pl.when(k >= num_n)         # phase 1: masked-mean accumulation
    def _():
        keep = jnp.where(x < thr_ref[...], rvalid, 0.0)
        msum_ref[...] += jnp.sum(x * keep, axis=0, keepdims=True)
        cnt_ref[...] += jnp.sum(keep, axis=0, keepdims=True)

    @pl.when(k == 2 * num_n - 1)
    def _():
        m = msum_ref[...] * pl.reciprocal(cnt_ref[...], approx=False)
        o_ref[...] = jnp.broadcast_to(m, o_ref.shape).astype(o_ref.dtype)


# ----------------------------------------------------------------------------
# Wrapper
# ----------------------------------------------------------------------------
def initial_position_forward(x, *, tile_g=None, vmem_tile_budget=8 * 1024 * 1024):
    """x: (T, B, G) -> x0: (B, G), matching initial_position.forward."""
    T, B, G = x.shape
    n = T * B

    # Merge time/batch in the wrapper (free in HBM) and pad genes to a
    # lane-dense multiple of 128. Zero-padded gene columns are constant
    # (var == 0 -> keep-all -> mean 0) and are sliced off at the end.
    x2 = x.reshape(n, G)
    g_pad = pl.cdiv(G, 128) * 128
    if tile_g is None:
        tile_g = min(512, g_pad)
    else:
        tile_g = min(tile_g, g_pad)
    g_pad = pl.cdiv(g_pad, tile_g) * tile_g
    if g_pad != G:
        x2 = jnp.pad(x2, ((0, 0), (0, g_pad - G)))
    num_g = g_pad // tile_g

    # Largest f32 (rows, tile_g) input tile within the budget (double-buffered).
    max_rows = max(8, (vmem_tile_budget // (tile_g * 4 * 2)) // 8 * 8)

    if n <= max_rows:
        # Fast path: whole gene column resident in VMEM, single read of x.
        out = pl.pallas_call(
            _onepass_kernel,
            out_shape=jax.ShapeDtypeStruct((B, g_pad), x.dtype),
            grid=(num_g,),
            in_specs=[pl.BlockSpec((n, tile_g), lambda g: (0, g))],
            out_specs=pl.BlockSpec((B, tile_g), lambda g: (0, g)),
            compiler_params=pltpu.CompilerParams(
                dimension_semantics=("parallel",)),
        )(x2)
    else:
        # Streaming path: tile n, walk the data twice (moments, then masked mean).
        tile_n = max_rows
        n_pad = pl.cdiv(n, tile_n) * tile_n
        if n_pad != n:
            x2 = jnp.pad(x2, ((0, n_pad - n), (0, 0)))
        num_n = n_pad // tile_n
        kernel = functools.partial(_streaming_kernel,
                                   n_real=n, tile_n=tile_n, num_n=num_n)
        out = pl.pallas_call(
            kernel,
            out_shape=jax.ShapeDtypeStruct((B, g_pad), x.dtype),
            grid=(num_g, 2 * num_n),
            in_specs=[pl.BlockSpec((tile_n, tile_g),
                                   lambda g, k: (k % num_n, g))],
            out_specs=pl.BlockSpec((B, tile_g), lambda g, k: (0, g)),
            scratch_shapes=[pltpu.VMEM((1, tile_g), jnp.float32)] * 5,
            compiler_params=pltpu.CompilerParams(
                dimension_semantics=("parallel", "arbitrary")),
        )(x2)
    return out[:, :G]


def _reference(x):
    # Pure-JAX reference mirroring the PyTorch loop semantics.
    T, B, G = x.shape
    n = T * B
    xf = x.astype(jnp.float32).reshape(n, G)
    mean_g = xf.mean(axis=0, keepdims=True)
    var_g = jnp.sum((xf - mean_g) ** 2, axis=0, keepdims=True) / (n - 1)
    z = (xf - mean_g) / jnp.sqrt(var_g)
    z = jnp.where(jnp.isnan(z), jnp.zeros_like(z), z)
    mask = (z < 3.0).astype(jnp.float32)
    m = jnp.sum(xf * mask, axis=0) / jnp.sum(mask, axis=0)
    return jnp.broadcast_to(m[None, :], (B, G)).astype(x.dtype)


if __name__ == "__main__":
    # Small shapes implied by the forward: x is 3-D (time, batch/cells, genes).
    T, B, G = 8, 4, 16
    key = jax.random.PRNGKey(0)
    x = jax.random.normal(key, (T, B, G), dtype=jnp.float32) * 2.0 + 0.5
    # Constant gene column exercises the var == 0 (keep-all) path.
    x = x.at[:, :, 3].set(1.25)

    ref = jax.block_until_ready(_reference(x))

    # Fast (one-pass) path.
    out_fast = jax.block_until_ready(initial_position_forward(x))
    assert out_fast.shape == (B, G)
    assert np.allclose(np.asarray(out_fast), np.asarray(ref), rtol=1e-5, atol=1e-5)

    # Streaming path, forced by a tiny VMEM tile budget (tile_n = 8 < n = 32).
    out_stream = jax.block_until_ready(
        initial_position_forward(x, vmem_tile_budget=8 * 128 * 4 * 2))
    assert out_stream.shape == (B, G)
    assert np.allclose(np.asarray(out_stream), np.asarray(ref), rtol=1e-5, atol=1e-5)

    print("KERNEL_OK")
</pallas_src>

<mosaic_0001>
module attributes {stable_mosaic.version = 11 : i64} {
  func.func @_onepass_kernel(%arg0: i32, %arg1: memref<32x128xf32, #tpu.memory_space<vmem>>, %arg2: memref<4x128xf32, #tpu.memory_space<vmem>>) attributes {dimension_semantics = [#tpu.dimension_semantics<parallel>], iteration_bounds = array<i64: 1>, scalar_prefetch = 0 : i64, scratch_operands = 0 : i64, tpu.core_type = #tpu.core_type<tc>, window_params = [{transform_indices = @transform_0, window_bounds = array<i64: 32, 128>}, {transform_indices = @transform_1, window_bounds = array<i64: 4, 128>}]} {
    %c0 = arith.constant 0 : index
    %c0_0 = arith.constant 0 : index
    %0 = vector.load %arg1[%c0, %c0_0] : memref<32x128xf32, #tpu.memory_space<vmem>>, vector<32x128xf32>
    %cst = arith.constant dense<0.000000e+00> : vector<128xf32>
    %1 = vector.multi_reduction <add>, %0, %cst [0] : vector<32x128xf32> to vector<128xf32>
    %2 = vector.shape_cast %1 : vector<128xf32> to vector<1x128xf32>
    %cst_1 = arith.constant 3.125000e-02 : f32
    %3 = vector.broadcast %cst_1 : f32 to vector<1x128xf32>
    %4 = arith.mulf %2, %3 : vector<1x128xf32>
    %5 = vector.broadcast %4 : vector<1x128xf32> to vector<32x128xf32>
    %6 = arith.subf %0, %5 : vector<32x128xf32>
    %7 = arith.mulf %6, %6 : vector<32x128xf32>
    %cst_2 = arith.constant dense<0.000000e+00> : vector<128xf32>
    %8 = vector.multi_reduction <add>, %7, %cst_2 [0] : vector<32x128xf32> to vector<128xf32>
    %9 = vector.shape_cast %8 : vector<128xf32> to vector<1x128xf32>
    %cst_3 = arith.constant 0.0322580636 : f32
    %10 = vector.broadcast %cst_3 : f32 to vector<1x128xf32>
    %11 = arith.mulf %9, %10 : vector<1x128xf32>
    %cst_4 = arith.constant 0.000000e+00 : f32
    %12 = vector.broadcast %cst_4 : f32 to vector<1x128xf32>
    %13 = arith.cmpf ogt, %11, %12 : vector<1x128xf32>
    %14 = math.sqrt %11 : vector<1x128xf32>
    %cst_5 = arith.constant 3.000000e+00 : f32
    %15 = vector.broadcast %cst_5 : f32 to vector<1x128xf32>
    %16 = arith.mulf %15, %14 : vector<1x128xf32>
    %17 = arith.addf %4, %16 : vector<1x128xf32>
    %cst_6 = arith.constant 0x7F800000 : f32
    %18 = vector.broadcast %cst_6 : f32 to vector<1x128xf32>
    %19 = arith.select %13, %17, %18 : vector<1x128xi1>, vector<1x128xf32>
    %20 = vector.broadcast %19 : vector<1x128xf32> to vector<32x128xf32>
    %21 = arith.cmpf olt, %0, %20 : vector<32x128xf32>
    %22 = arith.extui %21 : vector<32x128xi1> to vector<32x128xi32>
    %23 = arith.sitofp %22 : vector<32x128xi32> to vector<32x128xf32>
    %cst_7 = arith.constant dense<0.000000e+00> : vector<128xf32>
    %24 = vector.multi_reduction <add>, %23, %cst_7 [0] : vector<32x128xf32> to vector<128xf32>
    %25 = vector.shape_cast %24 : vector<128xf32> to vector<1x128xf32>
    %26 = arith.mulf %0, %23 : vector<32x128xf32>
    %cst_8 = arith.constant dense<0.000000e+00> : vector<128xf32>
    %27 = vector.multi_reduction <add>, %26, %cst_8 [0] : vector<32x128xf32> to vector<128xf32>
    %28 = vector.shape_cast %27 : vector<128xf32> to vector<1x128xf32>
    %29 = tpu.reciprocal %25 : vector<1x128xf32> -> vector<1x128xf32>
    %30 = arith.mulf %28, %29 : vector<1x128xf32>
    %31 = vector.shape_cast %30 : vector<1x128xf32> to vector<1x128xf32>
    %32 = vector.broadcast %31 : vector<1x128xf32> to vector<4x128xf32>
    %c0_9 = arith.constant 0 : index
    %c0_10 = arith.constant 0 : index
    %33 = vector.load %arg2[%c0_9, %c0_10] : memref<4x128xf32, #tpu.memory_space<vmem>>, vector<4x128xf32>
    tpu.vector_store %arg2[%c0_9, %c0_10], %32 {strides = array<i32>} : memref<4x128xf32, #tpu.memory_space<vmem>>, vector<4x128xf32>,
    return
  }
  func.func @transform_0(%arg0: i32) -> (i32, i32) {
    %c0_i32 = arith.constant 0 : i32
    %c0_i32_0 = arith.constant 0 : i32
    return %c0_i32, %arg0 : i32, i32
  }
  func.func @transform_1(%arg0: i32) -> (i32, i32) {
    %c0_i32 = arith.constant 0 : i32
    %c0_i32_0 = arith.constant 0 : i32
    return %c0_i32, %arg0 : i32, i32
  }
}

</mosaic_0001>

<bundles_post_ra>
// kernel: tpu_custom_call.1
= control target key start
LH: loop header
LB: loop body
LE: loop exit
PB: predicated region body
PF: predicated region fallthrough
CT: control target
= control target key end

     0   :  { %6 = vsyncpa [#allocation3], 0  ;;  %s218_s0 = inlined_call_operand.hbm [shape: f32[32,128], index: 0, kind: input, shape index: {}]   ;;  %s219_s1 = inlined_call_operand.hbm [shape: f32[4,128], index: 1, kind: output, shape index: {}]  }
   0x1   :  { %7 = vsyncpa [#allocation4], 0  ;;  %s179_s6 = smov [#allocation2]   ;;  %s131_s10 = scalar_lea.hbm %s218_s0, 512 }
   0x2   :  { %s13_s7 = sshll.u32 %s179_s6, 4  ;;  %p132_p0 = scmp.ne.s32.totalorder %s218_s0, %s131_s10  ;;  %s14_s7 = int_to_ptr.vmem [resolvable:$true] %s13_s7 }
   0x3   :  { %p135_p1 = scmp.lt.u32.totalorder %s131_s10, %s218_s0 }
   0x5   :  { %p137_p2 = pnand %p135_p1, %p132_p0 }
   0x7   :  { %140 = shalt.err (!%p137_p2)
}
   0x8   :  { %s141_s15 = scalar_lea.vmem %s14_s7, 512  ;;  %p146_p4 = scmp.lt.s32.totalorder %s14_s7, %s14_s7 }
   0x9   :  { %p142_p3 = scmp.ne.s32.totalorder %s14_s7, %s141_s15  ;;  %p147_p5 = scmp.lt.s32.totalorder %s141_s15, %s141_s15 }
   0xb   :  { %p148_p6 = por %p147_p5, %p146_p4 }
   0xd   :  { %p149_p7 = pnand %p148_p6, %p142_p3 }
   0xf   :  { %152 = shalt.err (!%p149_p7)
}
  0x10   :  { %s180_s16 = smov 128   ;;  %s181_s17 = smov 8  }
  0x11   :  { %19 = dma.hbm_to_vmem [thread:$0]  %s218_s0, 512, %s14_s7, [#allocation3], %s180_s16, %s180_s16, %s181_s17  }
  0x12   :  { %175 = dma.done.wait [#allocation3], 512  }
  0x13   :  { %176 = vsyncadd [#allocation3], 4294966784  ;;  %v23_v0 = vld [vmem:[#allocation2] sm:$0xff]  ;;  %v24_v1 = vld [vmem:[#allocation2 + $0x8] sm:$0xff]  ;;  %v182_v40 = vmov 0.0   ;;  %s183_s0 = smov [#allocation5]  }
  0x14   :  { %v25_v2 = vld [vmem:[#allocation2 + $0x10] sm:$0xff]  ;;  %v27_v3 = vadd.f32 %v24_v1, %v23_v0  ;;  %v26_v4 = vld [vmem:[#allocation2 + $0x18] sm:$0xff]  ;;  %s109_s20 = sshll.u32 %s183_s0, 4  ;;  %s110_s20 = int_to_ptr.vmem [resolvable:$true] %s109_s20 }
  0x15   :  { %s153_s21 = scalar_lea.vmem %s110_s20, 64  ;;  %p158_p9 = scmp.lt.s32.totalorder %s110_s20, %s110_s20 }
  0x16   :  { %v28_v5 = vadd.f32 %v27_v3, %v25_v2  ;;  %p154_p8 = scmp.ne.s32.totalorder %s110_s20, %s153_s21  ;;  %p159_p10 = scmp.lt.s32.totalorder %s153_s21, %s153_s21 }
  0x18   :  { %v29_v6 = vadd.f32 %v28_v5, %v26_v4  ;;  %p160_p11 = por %p159_p10, %p158_p9 }
  0x1a   :  { %v30_v7 = vrot.slane %v29_v6, 4  ;;  %p161_p12 = pnand %p160_p11, %p154_p8 }
  0x1c   :  { %v31_v8 = vadd.f32 %v30_v7, %v29_v6 }
  0x1e   :  { %v32_v9 = vrot.slane %v31_v8, 2 }
  0x20   :  { %v33_v10 = vadd.f32 %v32_v9, %v31_v8 }
  0x22   :  { %v34_v11 = vrot.slane %v33_v10, 1 }
  0x24   :  { %v35_v12 = vadd.f32 %v34_v11, %v33_v10 }
  0x26   :  { %v36_v13 = vmul.f32 0.03125, %v35_v12 }
  0x28   :  { %v37_v14 = vsub.f32 %v23_v0, %v36_v13  ;;  %v38_v15 = vsub.f32 %v24_v1, %v36_v13  ;;  %v39_v16 = vsub.f32 %v25_v2, %v36_v13  ;;  %v40_v17 = vsub.f32 %v26_v4, %v36_v13 }
  0x2a   :  { %v41_v18 = vmul.f32 %v37_v14, %v37_v14  ;;  %v42_v19 = vmul.f32 %v38_v15, %v38_v15  ;;  %v43_v20 = vmul.f32 %v39_v16, %v39_v16  ;;  %v44_v21 = vmul.f32 %v40_v17, %v40_v17 }
  0x2c   :  { %v45_v22 = vadd.f32 %v42_v19, %v41_v18 }
  0x2e   :  { %v46_v23 = vadd.f32 %v45_v22, %v43_v20 }
  0x30   :  { %v47_v24 = vadd.f32 %v46_v23, %v44_v21 }
  0x32   :  { %v48_v25 = vrot.slane %v47_v24, 4 }
  0x34   :  { %v49_v26 = vadd.f32 %v48_v25, %v47_v24 }
  0x36   :  { %v50_v27 = vrot.slane %v49_v26, 2 }
  0x38   :  { %v51_v28 = vadd.f32 %v50_v27, %v49_v26 }
  0x3a   :  { %v52_v29 = vrot.slane %v51_v28, 1 }
  0x3c   :  { %v53_v30 = vadd.f32 %v52_v29, %v51_v28 }
  0x3e   :  { %v54_v31 = vmul.f32 0.032258064, %v53_v30 }
  0x40   :  { %127 = vrsqrt.f32 %v54_v31  ;;  %vm58_vm0 = vcmp.eq.f32.partialorder %v54_v31, inf  ;;  %v61_v33 = vand.u32 2147483648, %v54_v31  ;;  %vm60_vm1 = vcmp.eq.f32.partialorder %v54_v31, 0.0 }
  0x41   :  { %vm55_vm2 = vcmp.gt.f32.partialorder %v54_v31, 0.0 }
  0x4a   :  { %v128_v32 = vpop.eup %127 }
  0x4b   :  { %v57_v34 = vmul.f32 %v128_v32, %v54_v31 }
  0x4d   :  { %v59_v35 = vsel %vm58_vm0, %v54_v31, %v57_v34 }
  0x4e   :  { %v62_v36 = vsel %vm60_vm1, %v61_v33, %v59_v35 }
  0x4f   :  { %v63_v37 = vmul.f32 3.0, %v62_v36 }
  0x51   :  { %v64_v38 = vadd.f32 %v63_v37, %v36_v13 }
  0x53   :  { %v65_v39 = vsel %vm55_vm2, %v64_v38, inf }
  0x54   :  { %vm66_vm3 = vcmp.lt.f32.partialorder %v23_v0, %v65_v39  ;;  %vm67_vm4 = vcmp.lt.f32.partialorder %v24_v1, %v65_v39  ;;  %vm68_vm5 = vcmp.lt.f32.partialorder %v25_v2, %v65_v39  ;;  %vm69_vm6 = vcmp.lt.f32.partialorder %v26_v4, %v65_v39 }
  0x55   :  { %v118_v41 = vsel %vm66_vm3, 1.0, %v182_v40  ;;  %v119_v42 = vsel %vm67_vm4, 1.0, %v182_v40  ;;  %v120_v43 = vsel %vm68_vm5, 1.0, %v182_v40  ;;  %v121_v48 = vsel %vm69_vm6, 1.0, %v182_v40 }
  0x56   :  { %v78_v44 = vadd.f32 %v119_v42, %v118_v41  ;;  %v87_v45 = vmul.f32 %v118_v41, %v23_v0  ;;  %v88_v46 = vmul.f32 %v119_v42, %v24_v1  ;;  %v89_v47 = vmul.f32 %v120_v43, %v25_v2 }
  0x57   :  { %v90_v50 = vmul.f32 %v121_v48, %v26_v4 }
  0x58   :  { %v79_v49 = vadd.f32 %v120_v43, %v78_v44  ;;  %v91_v51 = vadd.f32 %v88_v46, %v87_v45 }
  0x5a   :  { %v80_v52 = vadd.f32 %v121_v48, %v79_v49  ;;  %v92_v53 = vadd.f32 %v91_v51, %v89_v47 }
  0x5c   :  { %v81_v54 = vrot.slane %v80_v52, 4  ;;  %v93_v55 = vadd.f32 %v92_v53, %v90_v50 }
  0x5e   :  { %v82_v56 = vadd.f32 %v81_v54, %v80_v52  ;;  %v94_v57 = vrot.slane %v93_v55, 4 }
  0x60   :  { %v83_v58 = vrot.slane %v82_v56, 2  ;;  %v95_v59 = vadd.f32 %v94_v57, %v93_v55 }
  0x62   :  { %v84_v60 = vadd.f32 %v83_v58, %v82_v56  ;;  %v96_v61 = vrot.slane %v95_v59, 2 }
  0x64   :  { %v85_v62 = vrot.slane %v84_v60, 1  ;;  %v97_v3 = vadd.f32 %v96_v61, %v95_v59 }
  0x66   :  { %v86_v63 = vadd.f32 %v85_v62, %v84_v60  ;;  %v98_v0 = vrot.slane %v97_v3, 1 }
  0x68   :  { %129 = vrcp.f32 %v86_v63  ;;  %v99_v1 = vadd.f32 %v98_v0, %v97_v3 }
  0x72   :  { %v130_v2 = vpop.eup %129 }
  0x73   :  { %v101_v4 = vmul.f32 %v130_v2, %v99_v1 }
  0x75   :  { %102 = vst [vmem:[#allocation5] sm:$0xf] %v101_v4 }
  0x76   :  { %164 = shalt.err (!%p161_p12)
}
  0x77   :  { %s165_s24 = scalar_lea.hbm %s219_s1, 64 }
  0x78   :  { %p166_p13 = scmp.ne.s32.totalorder %s219_s1, %s165_s24  ;;  %p169_p0 = scmp.lt.u32.totalorder %s165_s24, %s219_s1 }
  0x7a   :  { %p171_p1 = pnand %p169_p0, %p166_p13 }
  0x7c   :  { %174 = shalt.err (!%p171_p1)
}
  0x7d   :  { %112 = dma.vmem_to_hbm [thread:$0]  %s110_s20, 64, %s219_s1, [#allocation4]  }
  0x7e   :  { %177 = dma.done.wait [#allocation4], 64  }
  0x7f   :  { %178 = vsyncadd [#allocation4], 4294967232 }
  0x80   :  { %116 = vsyncpa [#allocation3], 1 }
  0x81   :  { %117 = vsyncpa [#allocation4], 1 }

</bundles_post_ra>
